<compile_context>
chip_gen: v7x
topology: tpu7x:2x2x1
jax: 0.10.0
libtpu: 0.0.40
codegen_flags: <defaults>
</compile_context>

<pallas_src>
import functools

import jax
import jax.numpy as jnp
from jax import lax
from jax.experimental import pallas as pl
from jax.experimental.pallas import tpu as pltpu

# ----------------------------------------------------------------------------
# Module configuration (single TP rank: tp_size == 1)
# ----------------------------------------------------------------------------
HIDDEN = 256
NUM_HEADS = 2
NUM_KV_HEADS = 1                      # GQA: 2 query heads share 1 kv head
HEAD_DIM = HIDDEN // NUM_HEADS        # 128 (lane aligned)
Q_SIZE = NUM_HEADS * HEAD_DIM         # 256
KV_SIZE = NUM_KV_HEADS * HEAD_DIM     # 128
SCALING = HEAD_DIM ** -0.5
ROPE_THETA = 10000.0
SEQ = 8                               # multiple of 8: sublane-aligned stacking


# ----------------------------------------------------------------------------
# Pallas kernel: fused qkv-proj + rope + causal GQA attention + out-proj
# ----------------------------------------------------------------------------
def internlm2_attn_kernel(x_ref, wqkv_ref, wo_ref, rope_ref, o_ref):
    S = x_ref.shape[0]

    # ---- wqkv projection (MXU; bf16 weights as stored, f32 accumulation).
    # The 1/sqrt(hd) attention scale is pre-folded into the q columns of wqkv.
    qkv = jnp.dot(x_ref[...].astype(jnp.bfloat16), wqkv_ref[...],
                  preferred_element_type=jnp.float32)            # [S, q+2kv]
    q = qkv[:, :Q_SIZE]                                          # [S, nh*hd]
    k = qkv[:, Q_SIZE:Q_SIZE + KV_SIZE]                          # [S, hd]
    v = qkv[:, Q_SIZE + KV_SIZE:]                                # [S, hd]

    # ---- neox rope:  t*cos + roll(t, hd/2)*sin_signed ----
    # rope_ref: [S, 2*hd]; lanes [0,hd)=cos, [hd,2hd)=sin with rotate_half's
    # sign pre-baked.  Reused for every head block (no per-head HBM tiling).
    cos = rope_ref[:, :HEAD_DIM]                                 # [S, hd]
    sin = rope_ref[:, HEAD_DIM:]                                 # [S, hd]
    half = HEAD_DIM // 2

    def rope(t):                                                 # [S, hd]
        return t * cos + pltpu.roll(t, half, 1) * sin

    # stack query heads on the sublane axis (head-major): [nh*S, hd].
    # Lane slices at 128-lane boundaries + sublane concat at S(=8)-row
    # boundaries: cheap vreg moves, no relayout.
    q_all = jnp.concatenate(
        [rope(q[:, h * HEAD_DIM:(h + 1) * HEAD_DIM]) for h in range(NUM_HEADS)],
        axis=0)                                                  # [nh*S, hd]
    k = rope(k)                                                  # [S, hd]

    # ---- scores for all heads in one MXU op (rhs contracted on last dim) ----
    scores = lax.dot_general(
        q_all.astype(jnp.bfloat16), k.astype(jnp.bfloat16),
        dimension_numbers=(((1,), (1,)), ((), ())),
        preferred_element_type=jnp.float32)                      # [nh*S, S]

    # causal mask: row r of the head-major stack is query token r mod S
    row = lax.broadcasted_iota(jnp.int32, (NUM_HEADS * S, S), 0)
    col = lax.broadcasted_iota(jnp.int32, (NUM_HEADS * S, S), 1)
    causal = col <= jnp.remainder(row, S)
    scores = jnp.where(causal, scores, -1e30)

    # ---- softmax strictly in f32 (v5e-safe); reciprocal on the EUP ----
    m = jnp.max(scores, axis=-1, keepdims=True)
    p = jnp.exp(scores - m)
    p = p * pl.reciprocal(jnp.sum(p, axis=-1, keepdims=True), approx=True)

    # ---- P @ V for all heads at once: [nh*S, hd] ----
    ctx_all = jnp.dot(p.astype(jnp.bfloat16), v.astype(jnp.bfloat16),
                      preferred_element_type=jnp.float32)

    # back to [S, nh*hd]: sublane slices + lane concat at vreg boundaries
    attn_out = jnp.concatenate(
        [ctx_all[h * S:(h + 1) * S, :] for h in range(NUM_HEADS)], axis=-1)

    # ---- output projection (MXU; bf16 weights as stored) ----
    o_ref[...] = jnp.dot(attn_out.astype(jnp.bfloat16), wo_ref[...],
                         preferred_element_type=jnp.float32).astype(o_ref.dtype)


# ----------------------------------------------------------------------------
# Host-side helpers
# ----------------------------------------------------------------------------
def _cos_sin(positions):
    inv_freq = 1.0 / (ROPE_THETA ** (
        jnp.arange(0, HEAD_DIM, 2, dtype=jnp.float32) / HEAD_DIM))
    freqs = positions.astype(jnp.float32)[:, None] * inv_freq[None, :]  # [S, hd/2]
    cos = jnp.cos(freqs)
    sin = jnp.sin(freqs)
    return (jnp.concatenate([cos, cos], axis=-1),      # [S, hd]
            jnp.concatenate([sin, sin], axis=-1))      # [S, hd]


def _rope_table(positions):
    # Lane-dense packed table [S, 2*hd]:
    #   lanes [0, hd)    -> cos (neox: repeated halves)
    #   lanes [hd, 2*hd) -> sin with rotate_half's sign baked in
    cos, sin = _cos_sin(positions)
    half = HEAD_DIM // 2
    sin_signed = jnp.concatenate([-sin[:, :half], sin[:, half:]], axis=-1)
    return jnp.concatenate([cos, sin_signed], axis=-1)           # [S, 2*hd]


def prepare_weights(wqkv_f32, wo_f32):
    """One-time host prep: fold the attention scale into the q columns of
    wqkv (rope is linear in q, so this equals scaling the scores) and store
    both weights as bf16 (halves HBM traffic; MXU accumulates in f32)."""
    col_scale = jnp.concatenate(
        [jnp.full((Q_SIZE,), SCALING, jnp.float32),
         jnp.ones((2 * KV_SIZE,), jnp.float32)])
    wqkv_prep = (wqkv_f32 * col_scale[None, :]).astype(jnp.bfloat16)
    wo_prep = wo_f32.astype(jnp.bfloat16)
    return wqkv_prep, wo_prep


@jax.jit
def internlm2_attention(positions, hidden_states, wqkv_bf16, wo_bf16):
    rope_tab = _rope_table(positions)                            # [S, 2*hd] f32
    S = hidden_states.shape[0]
    vmem = pl.BlockSpec(memory_space=pltpu.MemorySpace.VMEM)

    flops = (2 * S * HIDDEN * (Q_SIZE + 2 * KV_SIZE)   # wqkv projection
             + 2 * NUM_HEADS * S * S * HEAD_DIM        # scores
             + 2 * NUM_HEADS * S * S * HEAD_DIM        # p @ v
             + 2 * S * Q_SIZE * HIDDEN)                # out projection
    bytes_accessed = (4 * S * HIDDEN                          # x (f32)
                      + 2 * HIDDEN * (Q_SIZE + 2 * KV_SIZE)   # wqkv (bf16)
                      + 2 * Q_SIZE * HIDDEN                   # wo (bf16)
                      + 4 * S * 2 * HEAD_DIM                  # rope table
                      + 4 * S * HIDDEN)                       # output

    return pl.pallas_call(
        internlm2_attn_kernel,
        out_shape=jax.ShapeDtypeStruct((S, HIDDEN), hidden_states.dtype),
        in_specs=[vmem, vmem, vmem, vmem],
        out_specs=vmem,
        compiler_params=pltpu.CompilerParams(),
        cost_estimate=pl.CostEstimate(
            flops=flops,
            transcendentals=NUM_HEADS * S * S,
            bytes_accessed=bytes_accessed),
    )(hidden_states, wqkv_bf16, wo_bf16, rope_tab)


# ----------------------------------------------------------------------------
# Pure-JAX reference (same math on the original f32 weights, high precision)
# ----------------------------------------------------------------------------
def reference(positions, hidden_states, wqkv, wo):
    hp = functools.partial(jnp.dot, precision=lax.Precision.HIGHEST)
    cos, sin = _cos_sin(positions)
    S = hidden_states.shape[0]
    qkv = hp(hidden_states, wqkv)
    q, k, v = (qkv[:, :Q_SIZE],
               qkv[:, Q_SIZE:Q_SIZE + KV_SIZE],
               qkv[:, Q_SIZE + KV_SIZE:])

    def rope(t, n_heads):
        t = t.reshape(S, n_heads, HEAD_DIM)
        half = HEAD_DIM // 2
        rot = jnp.concatenate([-t[..., half:], t[..., :half]], axis=-1)
        return t * cos[:, None, :] + rot * sin[:, None, :]

    qh = rope(q, NUM_HEADS)                                      # [S, nh, hd]
    kh = rope(k, NUM_KV_HEADS)                                   # [S, nkv, hd]
    vh = v.reshape(S, NUM_KV_HEADS, HEAD_DIM)
    group = NUM_HEADS // NUM_KV_HEADS
    kh = jnp.repeat(kh, group, axis=1)                           # [S, nh, hd]
    vh = jnp.repeat(vh, group, axis=1)

    scores = jnp.einsum('qhd,khd->hqk', qh, kh,
                        precision=lax.Precision.HIGHEST) * SCALING
    causal = jnp.tril(jnp.ones((S, S), dtype=bool))
    scores = jnp.where(causal[None], scores, -1e30)
    p = jax.nn.softmax(scores, axis=-1)
    ctx = jnp.einsum('hqk,khd->qhd', p, vh,
                     precision=lax.Precision.HIGHEST).reshape(S, NUM_HEADS * HEAD_DIM)
    return hp(ctx, wo)


# ----------------------------------------------------------------------------
if __name__ == "__main__":
    key = jax.random.PRNGKey(0)
    k_x, k_wqkv, k_wo = jax.random.split(key, 3)

    positions = jnp.arange(SEQ, dtype=jnp.int32)
    hidden_states = jax.random.normal(k_x, (SEQ, HIDDEN), dtype=jnp.float32)
    # Deterministic synthetic weights, stored pre-transposed ([in, out]).
    wqkv = 0.02 * jax.random.normal(k_wqkv, (HIDDEN, Q_SIZE + 2 * KV_SIZE),
                                    dtype=jnp.float32)
    wo = 0.02 * jax.random.normal(k_wo, (Q_SIZE, HIDDEN), dtype=jnp.float32)

    # One-time host prep: fold attention scale into q columns, cast to bf16.
    wqkv_bf16, wo_bf16 = prepare_weights(wqkv, wo)

    out = internlm2_attention(positions, hidden_states, wqkv_bf16, wo_bf16)
    out = jax.block_until_ready(out)

    ref = reference(positions, hidden_states, wqkv, wo)
    assert out.shape == (SEQ, HIDDEN)
    assert bool(jnp.all(jnp.isfinite(out)))
    max_err = float(jnp.max(jnp.abs(out - ref)))
    # bf16 weights / bf16 MXU operands with f32 accumulation -> slightly looser
    # tolerance than an all-f32 version (expected error ~1e-3 on outputs of
    # magnitude ~0.1).
    assert bool(jnp.allclose(out, ref, atol=1e-2, rtol=1e-2)), \
        f"max abs err {max_err}"

    print("KERNEL_OK")
</pallas_src>

<mosaic_0001>
module attributes {stable_mosaic.version = 11 : i64} {
  func.func @internlm2_attn_kernel(%arg0: memref<8x256xf32, #tpu.memory_space<vmem>>, %arg1: memref<256x512xbf16, #tpu.memory_space<vmem>>, %arg2: memref<256x256xbf16, #tpu.memory_space<vmem>>, %arg3: memref<8x256xf32, #tpu.memory_space<vmem>>, %arg4: memref<8x256xf32, #tpu.memory_space<vmem>>) attributes {dimension_semantics = [], scalar_prefetch = 0 : i64, scratch_operands = 0 : i64, tpu.core_type = #tpu.core_type<tc>} {
    %c0 = arith.constant 0 : index
    %c0_0 = arith.constant 0 : index
    %0 = vector.load %arg0[%c0, %c0_0] : memref<8x256xf32, #tpu.memory_space<vmem>>, vector<8x256xf32>
    %1 = arith.truncf %0 : vector<8x256xf32> to vector<8x256xbf16>
    %c0_1 = arith.constant 0 : index
    %c0_2 = arith.constant 0 : index
    %2 = vector.load %arg1[%c0_1, %c0_2] : memref<256x512xbf16, #tpu.memory_space<vmem>>, vector<256x512xbf16>
    %cst = arith.constant dense<0.000000e+00> : vector<8x512xf32>
    %3 = tpu.matmul %1, %2, %cst {dimension_numbers = #tpu.dot_dimension_numbers<[1], [0], [0], [1], [0, 0, 1, 1], [], []>} : vector<8x256xbf16>, vector<256x512xbf16>, vector<8x512xf32> -> vector<8x512xf32>
    %4 = vector.extract_strided_slice %3 {offsets = [0, 0], sizes = [8, 256], strides = [1, 1]} : vector<8x512xf32> to vector<8x256xf32>
    %5 = vector.extract_strided_slice %3 {offsets = [0, 256], sizes = [8, 128], strides = [1, 1]} : vector<8x512xf32> to vector<8x128xf32>
    %6 = vector.extract_strided_slice %3 {offsets = [0, 384], sizes = [8, 128], strides = [1, 1]} : vector<8x512xf32> to vector<8x128xf32>
    %c0_3 = arith.constant 0 : index
    %c0_4 = arith.constant 0 : index
    %7 = vector.load %arg3[%c0_3, %c0_4] : memref<8x256xf32, #tpu.memory_space<vmem>>, vector<8x128xf32>
    %c0_5 = arith.constant 0 : index
    %c128 = arith.constant 128 : index
    %8 = vector.load %arg3[%c0_5, %c128] : memref<8x256xf32, #tpu.memory_space<vmem>>, vector<8x128xf32>
    %9 = vector.extract_strided_slice %4 {offsets = [0, 0], sizes = [8, 128], strides = [1, 1]} : vector<8x256xf32> to vector<8x128xf32>
    %10 = arith.mulf %9, %7 : vector<8x128xf32>
    %c64_i32 = arith.constant 64 : i32
    %11 = tpu.dynamic_rotate %9 by %c64_i32 dim 1 : vector<8x128xf32>, i32 -> vector<8x128xf32>
    %12 = arith.mulf %11, %8 : vector<8x128xf32>
    %13 = arith.addf %10, %12 : vector<8x128xf32>
    %14 = vector.extract_strided_slice %4 {offsets = [0, 128], sizes = [8, 128], strides = [1, 1]} : vector<8x256xf32> to vector<8x128xf32>
    %15 = arith.mulf %14, %7 : vector<8x128xf32>
    %c64_i32_6 = arith.constant 64 : i32
    %16 = tpu.dynamic_rotate %14 by %c64_i32_6 dim 1 : vector<8x128xf32>, i32 -> vector<8x128xf32>
    %17 = arith.mulf %16, %8 : vector<8x128xf32>
    %18 = arith.addf %15, %17 : vector<8x128xf32>
    %19 = tpu.concatenate %13, %18 in 0 : vector<8x128xf32>, vector<8x128xf32> -> vector<16x128xf32>
    %20 = arith.mulf %5, %7 : vector<8x128xf32>
    %c64_i32_7 = arith.constant 64 : i32
    %21 = tpu.dynamic_rotate %5 by %c64_i32_7 dim 1 : vector<8x128xf32>, i32 -> vector<8x128xf32>
    %22 = arith.mulf %21, %8 : vector<8x128xf32>
    %23 = arith.addf %20, %22 : vector<8x128xf32>
    %24 = arith.truncf %19 : vector<16x128xf32> to vector<16x128xbf16>
    %25 = arith.truncf %23 : vector<8x128xf32> to vector<8x128xbf16>
    %cst_8 = arith.constant dense<0.000000e+00> : vector<16x8xf32>
    %26 = tpu.matmul %24, %25, %cst_8 {dimension_numbers = #tpu.dot_dimension_numbers<[1], [1], [0], [0], [0, 0, 1, 0], [], []>} : vector<16x128xbf16>, vector<8x128xbf16>, vector<16x8xf32> -> vector<16x8xf32>
    %27 = tpu.iota {dimensions = array<i32: 0>} : vector<16x8xi32>
    %28 = tpu.iota {dimensions = array<i32: 1>} : vector<16x8xi32>
    %c8_i32 = arith.constant 8 : i32
    %c0_i32 = arith.constant 0 : i32
    %29 = arith.cmpi eq, %c8_i32, %c0_i32 : i32
    %c1_i32 = arith.constant 1 : i32
    %30 = arith.select %29, %c1_i32, %c8_i32 : i32
    %31 = vector.broadcast %30 : i32 to vector<16x8xi32>
    %32 = arith.remsi %27, %31 : vector<16x8xi32>
    %c0_i32_9 = arith.constant 0 : i32
    %33 = vector.broadcast %c0_i32_9 : i32 to vector<16x8xi32>
    %34 = arith.cmpi ne, %32, %33 : vector<16x8xi32>
    %c0_i32_10 = arith.constant 0 : i32
    %35 = vector.broadcast %c0_i32_10 : i32 to vector<16x8xi32>
    %36 = arith.cmpi slt, %32, %35 : vector<16x8xi32>
    %c0_i32_11 = arith.constant 0 : i32
    %37 = arith.cmpi slt, %30, %c0_i32_11 : i32
    %38 = vector.broadcast %37 : i1 to vector<16x8xi1>
    %39 = vector.broadcast %38 : vector<16x8xi1> to vector<16x8xi1>
    %40 = arith.xori %36, %39 : vector<16x8xi1>
    %41 = arith.andi %40, %34 : vector<16x8xi1>
    %42 = vector.broadcast %30 : i32 to vector<16x8xi32>
    %43 = arith.addi %32, %42 : vector<16x8xi32>
    %44 = arith.select %41, %43, %32 : vector<16x8xi1>, vector<16x8xi32>
    %45 = arith.cmpi sle, %28, %44 : vector<16x8xi32>
    %cst_12 = arith.constant -1.000000e+30 : f32
    %46 = vector.broadcast %cst_12 : f32 to vector<16x8xf32>
    %47 = arith.select %45, %26, %46 : vector<16x8xi1>, vector<16x8xf32>
    %cst_13 = arith.constant dense<0xFF800000> : vector<16xf32>
    %48 = vector.multi_reduction <maximumf>, %47, %cst_13 [1] : vector<16x8xf32> to vector<16xf32>
    %49 = vector.shape_cast %48 : vector<16xf32> to vector<16x1xf32>
    %50 = vector.broadcast %49 : vector<16x1xf32> to vector<16x8xf32>
    %51 = arith.subf %47, %50 : vector<16x8xf32>
    %52 = math.exp %51 : vector<16x8xf32>
    %cst_14 = arith.constant dense<0.000000e+00> : vector<16xf32>
    %53 = vector.multi_reduction <add>, %52, %cst_14 [1] : vector<16x8xf32> to vector<16xf32>
    %54 = vector.shape_cast %53 : vector<16xf32> to vector<16x1xf32>
    %55 = tpu.reciprocal %54 {approx = true} : vector<16x1xf32> -> vector<16x1xf32>
    %56 = vector.broadcast %55 : vector<16x1xf32> to vector<16x8xf32>
    %57 = arith.mulf %52, %56 : vector<16x8xf32>
    %58 = arith.truncf %57 : vector<16x8xf32> to vector<16x8xbf16>
    %59 = arith.truncf %6 : vector<8x128xf32> to vector<8x128xbf16>
    %cst_15 = arith.constant dense<0.000000e+00> : vector<16x128xf32>
    %60 = tpu.matmul %58, %59, %cst_15 {dimension_numbers = #tpu.dot_dimension_numbers<[1], [0], [0], [1], [0, 0, 1, 1], [], []>} : vector<16x8xbf16>, vector<8x128xbf16>, vector<16x128xf32> -> vector<16x128xf32>
    %61 = vector.extract_strided_slice %60 {offsets = [0, 0], sizes = [8, 128], strides = [1, 1]} : vector<16x128xf32> to vector<8x128xf32>
    %62 = vector.extract_strided_slice %60 {offsets = [8, 0], sizes = [8, 128], strides = [1, 1]} : vector<16x128xf32> to vector<8x128xf32>
    %63 = tpu.concatenate %61, %62 in 1 : vector<8x128xf32>, vector<8x128xf32> -> vector<8x256xf32>
    %64 = arith.truncf %63 : vector<8x256xf32> to vector<8x256xbf16>
    %c0_16 = arith.constant 0 : index
    %c0_17 = arith.constant 0 : index
    %65 = vector.load %arg2[%c0_16, %c0_17] : memref<256x256xbf16, #tpu.memory_space<vmem>>, vector<256x256xbf16>
    %cst_18 = arith.constant dense<0.000000e+00> : vector<8x256xf32>
    %66 = tpu.matmul %64, %65, %cst_18 {dimension_numbers = #tpu.dot_dimension_numbers<[1], [0], [0], [1], [0, 0, 1, 1], [], []>} : vector<8x256xbf16>, vector<256x256xbf16>, vector<8x256xf32> -> vector<8x256xf32>
    %c0_19 = arith.constant 0 : index
    %c0_20 = arith.constant 0 : index
    %67 = vector.load %arg4[%c0_19, %c0_20] : memref<8x256xf32, #tpu.memory_space<vmem>>, vector<8x256xf32>
    tpu.vector_store %arg4[%c0_19, %c0_20], %66 {strides = array<i32>} : memref<8x256xf32, #tpu.memory_space<vmem>>, vector<8x256xf32>,
    return
  }
}

</mosaic_0001>

<bundles_post_ra>
// kernel: internlm2_attention.1
= control target key start
LH: loop header
LB: loop body
LE: loop exit
PB: predicated region body
PF: predicated region fallthrough
CT: control target
= control target key end

     0   :  { %9 = vsyncpa [#allocation3], 0  ;;  %s1381_s0 = inlined_call_operand.vmem [shape: f32[8,256], index: 0, kind: input, shape index: {}]   ;;  %s1382_s1 = inlined_call_operand.hbm [shape: bf16[256,512], index: 1, kind: input, shape index: {}]   ;;  %s1383_s2 = inlined_call_operand.hbm [shape: bf16[256,256], index: 2, kind: input, shape index: {}]   ;;  %s1384_s3 = inlined_call_operand.vmem [shape: f32[8,256], index: 3, kind: input, shape index: {}]   ;;  %s1385_s4 = inlined_call_operand.hbm [shape: f32[8,256], index: 4, kind: output, shape index: {}]  }
   0x1   :  { %10 = vsyncpa [#allocation6], 0 }
   0x2   :  { %11 = vsyncpa [#allocation4], 0  ;;  %s1283_s15 = smov [#allocation2]   ;;  %s1211_s19 = scalar_lea.hbm %s1382_s1, 8192 }
   0x3   :  { %s19_s16 = sshll.u32 %s1283_s15, 4  ;;  %p1212_p0 = scmp.ne.s32.totalorder %s1382_s1, %s1211_s19  ;;  %s20_s16 = int_to_ptr.vmem [resolvable:$true] %s19_s16 }
   0x4   :  { %p1215_p1 = scmp.lt.u32.totalorder %s1211_s19, %s1382_s1 }
   0x6   :  { %p1217_p2 = pnand %p1215_p1, %p1212_p0 }
   0x8   :  { %1220 = shalt.err (!%p1217_p2)
}
   0x9   :  { %s1221_s24 = scalar_lea.vmem %s20_s16, 8192  ;;  %p1226_p4 = scmp.lt.s32.totalorder %s20_s16, %s20_s16 }
   0xa   :  { %p1222_p3 = scmp.ne.s32.totalorder %s20_s16, %s1221_s24  ;;  %p1227_p5 = scmp.lt.s32.totalorder %s1221_s24, %s1221_s24 }
   0xc   :  { %p1228_p6 = por %p1227_p5, %p1226_p4 }
   0xe   :  { %p1229_p7 = pnand %p1228_p6, %p1222_p3 }
  0x10   :  { %1232 = shalt.err (!%p1229_p7)
}
  0x11   :  { %s1284_s25 = smov 256   ;;  %s1285_s26 = smov 16  }
  0x12   :  { %25 = dma.hbm_to_vmem [thread:$0]  %s1382_s1, 8192, %s20_s16, [#allocation3], %s1284_s25, %s1284_s25, %s1285_s26  }
  0x13   :  { %s1286_s29 = smov [#allocation5]   ;;  %s1233_s7 = scalar_lea.hbm %s1383_s2, 4096 }
  0x14   :  { %s31_s30 = sshll.u32 %s1286_s29, 4  ;;  %p1234_p8 = scmp.ne.s32.totalorder %s1383_s2, %s1233_s7  ;;  %s32_s30 = int_to_ptr.vmem [resolvable:$true] %s31_s30 }
  0x15   :  { %p1237_p9 = scmp.lt.u32.totalorder %s1233_s7, %s1383_s2 }
  0x17   :  { %p1239_p10 = pnand %p1237_p9, %p1234_p8 }
  0x19   :  { %1242 = shalt.err (!%p1239_p10)
}
  0x1a   :  { %s1243_s12 = scalar_lea.vmem %s32_s30, 4096  ;;  %p1248_p12 = scmp.lt.s32.totalorder %s32_s30, %s32_s30 }
  0x1b   :  { %p1244_p11 = scmp.ne.s32.totalorder %s32_s30, %s1243_s12  ;;  %p1249_p13 = scmp.lt.s32.totalorder %s1243_s12, %s1243_s12 }
  0x1d   :  { %p1250_p0 = por %p1249_p13, %p1248_p12 }
  0x1f   :  { %p1251_p1 = pnand %p1250_p0, %p1244_p11 }
  0x21   :  { %1254 = shalt.err (!%p1251_p1)
}
  0x22   :  { %s1287_s1 = smov 128   ;;  %s1288_s13 = smov 8  }
  0x23   :  { %37 = dma.hbm_to_vmem [thread:$0]  %s1383_s2, 4096, %s32_s30, [#allocation6], %s1287_s1, %s1287_s1, %s1288_s13  }
  0x24   :  { %1277 = dma.done.wait [#allocation3], 8192  }
  0x25   :  { %1278 = vsyncadd [#allocation3], 4294959104 }
  0x26   :  { %1279 = dma.done.wait [#allocation6], 4096  }
  0x27   :  { %1280 = vsyncadd [#allocation6], 4294963200  ;;  %v1059_v0 = vld [vmem:[#allocation2 + $0x4] ss:$16 sps:$4 sm:$0xff]   ;;  %v1061_v1 = vld [vmem:[#allocation2 + $0xc] ss:$16 sps:$4 sm:$0xff]  }
  0x28   :  { %435 = vmatprep.subr.bf16.mxu0 %v1059_v0  ;;  %v1063_v2 = vld [vmem:[#allocation2] ss:$16 sps:$4 sm:$0xff]   ;;  %v1064_v3 = vld [vmem:[#allocation2 + $0x8] ss:$16 sps:$4 sm:$0xff]   ;;  %476 = vmatprep.subr.bf16.mxu1 %v1061_v1  ;;  %v1065_v4 = vld [vmem:[#allocation2 + $0x24] ss:$16 sps:$4 sm:$0xff]  }
  0x29   :  { %436 = vmatpush1.bf16.msra.mxu0 %v1063_v2  ;;  %477 = vmatpush1.bf16.msra.mxu1 %v1064_v3  ;;  %v1067_v5 = vld [vmem:[#allocation2 + $0x2c] ss:$16 sps:$4 sm:$0xff]   ;;  %v1069_v6 = vld [vmem:[#allocation2 + $0x20] ss:$16 sps:$4 sm:$0xff]   ;;  %v1070_v7 = vld [vmem:[#allocation2 + $0x28] ss:$16 sps:$4 sm:$0xff]  }
  0x2a   :  { %437 = vmatprep.subr.bf16.mxu0 %v1065_v4  ;;  %478 = vmatprep.subr.bf16.mxu1 %v1067_v5  ;;  %v1071_v8 = vld [vmem:[#allocation2 + $0x44] ss:$16 sps:$4 sm:$0xff]   ;;  %v1073_v9 = vld [vmem:[#allocation2 + $0x4c] ss:$16 sps:$4 sm:$0xff]   ;;  %v1075_v10 = vld [vmem:[#allocation2 + $0x40] ss:$16 sps:$4 sm:$0xff]  }
  0x2b   :  { %v1076_v11 = vld [vmem:[#allocation2 + $0x48] ss:$16 sps:$4 sm:$0xff]   ;;  %v1077_v12 = vld [vmem:[#allocation2 + $0x64] ss:$16 sps:$4 sm:$0xff]   ;;  %v1079_v13 = vld [vmem:[#allocation2 + $0x6c] ss:$16 sps:$4 sm:$0xff]  }
  0x2c   :  { %v1081_v14 = vld [vmem:[#allocation2 + $0x60] ss:$16 sps:$4 sm:$0xff]   ;;  %v1082_v15 = vld [vmem:[#allocation2 + $0x68] ss:$16 sps:$4 sm:$0xff]   ;;  %v1083_v16 = vld [vmem:[#allocation2 + $0x84] ss:$16 sps:$4 sm:$0xff]  }
  0x2d   :  { %438 = vmatpush1.bf16.msra.mxu0 %v1069_v6  ;;  %479 = vmatpush1.bf16.msra.mxu1 %v1070_v7  ;;  %v1085_v17 = vld [vmem:[#allocation2 + $0x8c] ss:$16 sps:$4 sm:$0xff]   ;;  %v1087_v18 = vld [vmem:[#allocation2 + $0x80] ss:$16 sps:$4 sm:$0xff]   ;;  %v1088_v19 = vld [vmem:[#allocation2 + $0x88] ss:$16 sps:$4 sm:$0xff]  }
  0x2e   :  { %439 = vmatprep.subr.bf16.mxu0 %v1071_v8  ;;  %480 = vmatprep.subr.bf16.mxu1 %v1073_v9  ;;  %v1089_v20 = vld [vmem:[#allocation2 + $0xa4] ss:$16 sps:$4 sm:$0xff]   ;;  %v1091_v21 = vld [vmem:[#allocation2 + $0xac] ss:$16 sps:$4 sm:$0xff]   ;;  %v1093_v22 = vld [vmem:[#allocation2 + $0xa0] ss:$16 sps:$4 sm:$0xff]  }
  0x2f   :  { %v1094_v23 = vld [vmem:[#allocation2 + $0xa8] ss:$16 sps:$4 sm:$0xff]   ;;  %v1095_v24 = vld [vmem:[#allocation2 + $0xc4] ss:$16 sps:$4 sm:$0xff]   ;;  %v1097_v25 = vld [vmem:[#allocation2 + $0xcc] ss:$16 sps:$4 sm:$0xff]  }
  0x30   :  { %v1099_v26 = vld [vmem:[#allocation2 + $0xc0] ss:$16 sps:$4 sm:$0xff]   ;;  %v1100_v27 = vld [vmem:[#allocation2 + $0xc8] ss:$16 sps:$4 sm:$0xff]   ;;  %v1101_v28 = vld [vmem:[#allocation2 + $0xe4] ss:$16 sps:$4 sm:$0xff]  }
  0x31   :  { %440 = vmatpush1.bf16.msra.mxu0 %v1075_v10  ;;  %481 = vmatpush1.bf16.msra.mxu1 %v1076_v11  ;;  %v1103_v29 = vld [vmem:[#allocation2 + $0xec] ss:$16 sps:$4 sm:$0xff]   ;;  %v1105_v30 = vld [vmem:[#allocation2 + $0xe0] ss:$16 sps:$4 sm:$0xff]   ;;  %v1106_v31 = vld [vmem:[#allocation2 + $0xe8] ss:$16 sps:$4 sm:$0xff]  }
  0x32   :  { %441 = vmatprep.subr.bf16.mxu0 %v1077_v12  ;;  %482 = vmatprep.subr.bf16.mxu1 %v1079_v13  ;;  %v1107_v32 = vld [vmem:[#allocation2 + $0x104] ss:$16 sps:$4 sm:$0xff]   ;;  %v1109_v33 = vld [vmem:[#allocation2 + $0x10c] ss:$16 sps:$4 sm:$0xff]   ;;  %v1111_v34 = vld [vmem:[#allocation2 + $0x100] ss:$16 sps:$4 sm:$0xff]  }
  0x33   :  { %v1112_v35 = vld [vmem:[#allocation2 + $0x108] ss:$16 sps:$4 sm:$0xff]   ;;  %v1113_v36 = vld [vmem:[#allocation2 + $0x124] ss:$16 sps:$4 sm:$0xff]   ;;  %v1115_v37 = vld [vmem:[#allocation2 + $0x12c] ss:$16 sps:$4 sm:$0xff]  }
  0x34   :  { %v1117_v38 = vld [vmem:[#allocation2 + $0x120] ss:$16 sps:$4 sm:$0xff]   ;;  %v1118_v39 = vld [vmem:[#allocation2 + $0x128] ss:$16 sps:$4 sm:$0xff]   ;;  %v1119_v40 = vld [vmem:[#allocation2 + $0x144] ss:$16 sps:$4 sm:$0xff]  }
  0x35   :  { %442 = vmatpush1.bf16.msra.mxu0 %v1081_v14  ;;  %483 = vmatpush1.bf16.msra.mxu1 %v1082_v15  ;;  %v1121_v41 = vld [vmem:[#allocation2 + $0x14c] ss:$16 sps:$4 sm:$0xff]   ;;  %v1123_v42 = vld [vmem:[#allocation2 + $0x140] ss:$16 sps:$4 sm:$0xff]   ;;  %v1124_v43 = vld [vmem:[#allocation2 + $0x148] ss:$16 sps:$4 sm:$0xff]  }
  0x36   :  { %443 = vmatprep.subr.bf16.mxu0 %v1083_v16  ;;  %484 = vmatprep.subr.bf16.mxu1 %v1085_v17  ;;  %v1125_v44 = vld [vmem:[#allocation2 + $0x164] ss:$16 sps:$4 sm:$0xff]   ;;  %v1127_v45 = vld [vmem:[#allocation2 + $0x16c] ss:$16 sps:$4 sm:$0xff]   ;;  %v1129_v46 = vld [vmem:[#allocation2 + $0x160] ss:$16 sps:$4 sm:$0xff]  }
  0x37   :  { %v1130_v47 = vld [vmem:[#allocation2 + $0x168] ss:$16 sps:$4 sm:$0xff]   ;;  %v1131_v49 = vld [vmem:[#allocation2 + $0x184] ss:$16 sps:$4 sm:$0xff]   ;;  %v1133_v50 = vld [vmem:[#allocation2 + $0x18c] ss:$16 sps:$4 sm:$0xff]  }
  0x38   :  { %v48_v48 = vld [vmem:[%s1381_s0 + $0x8] sm:$0xff]  ;;  %v1135_v52 = vld [vmem:[#allocation2 + $0x180] ss:$16 sps:$4 sm:$0xff]   ;;  %v1137_v54 = vld [vmem:[#allocation2 + $0x1a4] ss:$16 sps:$4 sm:$0xff]   ;;  %v1289_v4 = vmov 0.0  }
  0x39   :  { %444 = vmatpush1.bf16.msra.mxu0 %v1087_v18  ;;  %485 = vmatpush1.bf16.msra.mxu1 %v1088_v19  ;;  %v50_v51 = vpack.c.bf16 %v48_v48, %v48_v48  ;;  %v1136_v53 = vld [vmem:[#allocation2 + $0x188] ss:$16 sps:$4 sm:$0xff]   ;;  %v1139_v55 = vld [vmem:[#allocation2 + $0x1ac] ss:$16 sps:$4 sm:$0xff]   ;;  %v1141_v56 = vld [vmem:[#allocation2 + $0x1a0] ss:$16 sps:$4 sm:$0xff]  }
  0x3a   :  { %445 = vmatprep.subr.bf16.mxu0 %v1089_v20  ;;  %486 = vmatprep.subr.bf16.mxu1 %v1091_v21  ;;  %v1142_v57 = vld [vmem:[#allocation2 + $0x1a8] ss:$16 sps:$4 sm:$0xff]   ;;  %v1143_v58 = vld [vmem:[#allocation2 + $0x1c4] ss:$16 sps:$4 sm:$0xff]   ;;  %v1145_v59 = vld [vmem:[#allocation2 + $0x1cc] ss:$16 sps:$4 sm:$0xff]  }
  0x3b   :  { %467 = vmatprep.mubr.bf16.mxu0 %v50_v51  ;;  %508 = vmatprep.mubr.bf16.mxu1 %v50_v51  ;;  %v1147_v60 = vld [vmem:[#allocation2 + $0x1c0] ss:$16 sps:$4 sm:$0xff]   ;;  %v1148_v61 = vld [vmem:[#allocation2 + $0x1c8] ss:$16 sps:$4 sm:$0xff]   ;;  %v1149_v62 = vld [vmem:[#allocation2 + $0x1e4] ss:$16 sps:$4 sm:$0xff]  }
  0x3c   :  { %v1151_v63 = vld [vmem:[#allocation2 + $0x1ec] ss:$16 sps:$4 sm:$0xff]   ;;  %v1153_v0 = vld [vmem:[#allocation2 + $0x1e0] ss:$16 sps:$4 sm:$0xff]   ;;  %v1154_v1 = vld [vmem:[#allocation2 + $0x1e8] ss:$16 sps:$4 sm:$0xff]  }
  0x3d   :  { %446 = vmatpush1.bf16.msra.mxu0 %v1093_v22  ;;  %487 = vmatpush1.bf16.msra.mxu1 %v1094_v23  ;;  %v47_v2 = vld [vmem:[%s1381_s0] sm:$0xff]  ;;  %vm1290_vm0 = vmmov 0   ;;  %s1291_s19 = smov 64   ;;  %v518_v14 = vld [vmem:[%s1384_s3 + $0x8] sm:$0xff]  ;;  %vm638_vm1 = vcmask 1043456   ;;  %vm610_vm3 = vcmask 64512  }
  0x3e   :  { %447 = vmatprep.subr.bf16.mxu0 %v1095_v24  ;;  %488 = vmatprep.subr.bf16.mxu1 %v1097_v25  ;;  %v49_v3 = vpack.c.bf16 %v47_v2, %v47_v2  ;;  %v517_v13 = vld [vmem:[%s1384_s3] sm:$0xff]  ;;  %v1170_v2 = vld [vmem:[#allocation5 + $0x50] ss:$8 sps:$4 sm:$0xff]   ;;  %s1292_s3 = smov [#allocation7]  }
  0x3f   :  { %s926_s23 = sshll.u32 %s1292_s3, 4  ;;  %s927_s23 = int_to_ptr.vmem [resolvable:$true] %s926_s23 }
  0x40   :  { %s1255_s24 = scalar_lea.vmem %s927_s23, 256  ;;  %p1260_p3 = scmp.lt.s32.totalorder %s927_s23, %s927_s23 }
  0x41   :  { %448 = vmatpush1.bf16.msra.mxu0 %v1099_v26  ;;  %489 = vmatpush1.bf16.msra.mxu1 %v1100_v27  ;;  %p1256_p2 = scmp.ne.s32.totalorder %s927_s23, %s1255_s24  ;;  %p1261_p4 = scmp.lt.s32.totalorder %s1255_s24, %s1255_s24 }
  0x42   :  { %449 = vmatprep.subr.bf16.mxu0 %v1101_v28  ;;  %490 = vmatprep.subr.bf16.mxu1 %v1103_v29 }
  0x43   :  { %p1262_p5 = por %p1261_p4, %p1260_p3 }
  0x45   :  { %450 = vmatpush1.bf16.msra.mxu0 %v1105_v30  ;;  %491 = vmatpush1.bf16.msra.mxu1 %v1106_v31  ;;  %v577_v31 = vlaneseq  ;;  %p1263_p6 = pnand %p1262_p5, %p1256_p2 }
  0x46   :  { %451 = vmatprep.subr.bf16.mxu0 %v1107_v32  ;;  %492 = vmatprep.subr.bf16.mxu1 %v1109_v33 }
  0x47   :  { %v578_v32 = vshrl.u32 %v577_v31, 7 }
  0x49   :  { %452 = vmatpush1.bf16.msra.mxu0 %v1111_v34  ;;  %493 = vmatpush1.bf16.msra.mxu1 %v1112_v35  ;;  %v579_v33 = vadd.s32 8, %v578_v32  ;;  %v581_v34 = vand.u32 127, %v577_v31  ;;  %v586_v35 = vand.u32 7, %v578_v32 }
  0x4a   :  { %453 = vmatprep.subr.bf16.mxu0 %v1113_v36  ;;  %494 = vmatprep.subr.bf16.mxu1 %v1115_v37 }
  0x4b   :  { %v593_v36 = vand.u32 7, %v579_v33  ;;  %vm606_vm2 = vcmp.le.s32.totalorder %v581_v34, %v586_v35 }
  0x4d   :  { %454 = vmatpush1.bf16.msra.mxu0 %v1117_v38  ;;  %495 = vmatpush1.bf16.msra.mxu1 %v1118_v39  ;;  %vm607_vm4 = vcmp.le.s32.totalorder %v581_v34, %v593_v36 }
  0x4e   :  { %455 = vmatprep.subr.bf16.mxu0 %v1119_v40  ;;  %496 = vmatprep.subr.bf16.mxu1 %v1121_v41 }
  0x51   :  { %456 = vmatpush1.bf16.msra.mxu0 %v1123_v42  ;;  %497 = vmatpush1.bf16.msra.mxu1 %v1124_v43 }
  0x52   :  { %457 = vmatprep.subr.bf16.mxu0 %v1125_v44  ;;  %498 = vmatprep.subr.bf16.mxu1 %v1127_v45 }
  0x55   :  { %458 = vmatpush1.bf16.msra.mxu0 %v1129_v46  ;;  %499 = vmatpush1.bf16.msra.mxu1 %v1130_v47 }
  0x56   :  { %459 = vmatprep.subr.bf16.mxu0 %v1131_v49  ;;  %500 = vmatprep.subr.bf16.mxu1 %v1133_v50 }
  0x59   :  { %460 = vmatpush1.bf16.msra.mxu0 %v1135_v52  ;;  %501 = vmatpush1.bf16.msra.mxu1 %v1136_v53 }
  0x5a   :  { %461 = vmatprep.subr.bf16.mxu0 %v1137_v54  ;;  %502 = vmatprep.subr.bf16.mxu1 %v1139_v55  ;;  %v1155_v55 = vld [vmem:[#allocation5] ss:$8 sps:$4 sm:$0xff]  }
  0x5d   :  { %462 = vmatpush1.bf16.msra.mxu0 %v1141_v56  ;;  %503 = vmatpush1.bf16.msra.mxu1 %v1142_v57  ;;  %v1157_v56 = vld [vmem:[#allocation5 + $0x4] ss:$8 sps:$4 sm:$0xff]   ;;  %v1160_v57 = vld [vmem:[#allocation5 + $0x14] ss:$8 sps:$4 sm:$0xff]  }
  0x5e   :  { %463 = vmatprep.subr.bf16.mxu0 %v1143_v58  ;;  %504 = vmatprep.subr.bf16.mxu1 %v1145_v59  ;;  %v1158_v58 = vld [vmem:[#allocation5 + $0x10] ss:$8 sps:$4 sm:$0xff]   ;;  %v1163_v59 = vld [vmem:[#allocation5 + $0x24] ss:$8 sps:$4 sm:$0xff]  }
  0x61   :  { %464 = vmatpush1.bf16.msra.mxu0 %v1147_v60  ;;  %505 = vmatpush1.bf16.msra.mxu1 %v1148_v61  ;;  %v1161_v60 = vld [vmem:[#allocation5 + $0x20] ss:$8 sps:$4 sm:$0xff]   ;;  %v1166_v61 = vld [vmem:[#allocation5 + $0x34] ss:$8 sps:$4 sm:$0xff]  }
  0x62   :  { %465 = vmatprep.subr.bf16.mxu0 %v1149_v62  ;;  %506 = vmatprep.subr.bf16.mxu1 %v1151_v63  ;;  %v1164_v62 = vld [vmem:[#allocation5 + $0x30] ss:$8 sps:$4 sm:$0xff]   ;;  %v1169_v63 = vld [vmem:[#allocation5 + $0x44] ss:$8 sps:$4 sm:$0xff]  }
  0x65   :  { %466 = vmatpush1.bf16.msra.mxu0 %v1153_v0  ;;  %507 = vmatpush1.bf16.msra.mxu1 %v1154_v1  ;;  %v1167_v0 = vld [vmem:[#allocation5 + $0x40] ss:$8 sps:$4 sm:$0xff]   ;;  %v1172_v1 = vld [vmem:[#allocation5 + $0x54] ss:$8 sps:$4 sm:$0xff]  }
  0x66   :  { %1037 = vmatprep.subr.bf16.mxu1 %v1289_v4  ;;  %877 = vmatprep.subr.bf16.mxu0 %v1157_v56 }
  0x68   :  { %468 = vmatmul.mubr.bf16.vlgmr.msra.gmra.mrb[0].mxu0 %v49_v3  ;;  %509 = vmatmul.mubr.bf16.vlgmr.msra.gmra.mrb[0].mxu1 %v49_v3  ;;  %v1175_v3 = vld [vmem:[#allocation5 + $0x64] ss:$8 sps:$4 sm:$0xff]  }
  0x69   :  { %1039 = vmatprep.mubr.msk.bf16.mxu1 %vm1290_vm0, %v1289_v4  ;;  %878 = vmatpush1.bf16.msra.mxu0 %v1155_v55 }
  0x6a   :  { %879 = vmatprep.subr.bf16.mxu0 %v1160_v57 }
  0x6d   :  { %880 = vmatpush1.bf16.msra.mxu0 %v1158_v58 }
  0x6e   :  { %881 = vmatprep.subr.bf16.mxu0 %v1163_v59 }
  0x71   :  { %882 = vmatpush1.bf16.msra.mxu0 %v1161_v60 }
  0x72   :  { %883 = vmatprep.subr.bf16.mxu0 %v1166_v61 }
  0x75   :  { %884 = vmatpush1.bf16.msra.mxu0 %v1164_v62 }
  0x76   :  { %885 = vmatprep.subr.bf16.mxu0 %v1169_v63 }
  0x79   :  { %886 = vmatpush1.bf16.msra.mxu0 %v1167_v0 }
  0x7a   :  { %887 = vmatprep.subr.bf16.mxu0 %v1172_v1 }
  0x7d   :  { %888 = vmatpush1.bf16.msra.mxu0 %v1170_v2 }
  0x7e   :  { %889 = vmatprep.subr.bf16.mxu0 %v1175_v3 }
 0x13b   :  { %v469_v5 = vpop.f32.mrb[0].mxu0  ;;  %v510_v6 = vpop.f32.mrb[0].mxu1 }
 0x13c   :  { %530 = vrot.lane.b32.xlu0 %v510_v6, %s1291_s19  ;;  %v471_v7 = vpop.f32.mrb[1].mxu0  ;;  %v512_v8 = vpop.f32.mrb[1].mxu1  ;;  %v529_v16 = vmul.f32 %v517_v13, %v510_v6  ;;  %v519_v22 = vmul.f32 %v517_v13, %v469_v5  ;;  %v1176_v6 = vld [vmem:[#allocation5 + $0x70] ss:$8 sps:$4 sm:$0xff]  }
 0x13d   :  { %v514_v9 = vpop.f32.mrb[2].mxu1  ;;  %525 = vrot.lane.b32.xlu1 %v471_v7, %s1291_s19  ;;  %v473_v10 = vpop.f32.mrb[2].mxu0  ;;  %v524_v23 = vmul.f32 %v517_v13, %v471_v7  ;;  %v634_v29 = vpack.c.bf16 %v512_v8, %v512_v8  ;;  %v1181_v7 = vld [vmem:[#allocation5 + $0x84] ss:$8 sps:$4 sm:$0xff]   ;;  %v1179_v8 = vld [vmem:[#allocation5 + $0x80] ss:$8 sps:$4 sm:$0xff]  }
 0x13e   :  { %v515_v11 = vpop.f32.mrb[3].mxu1  ;;  %v474_v12 = vpop.f32.mrb[3].mxu0  ;;  %v1184_v9 = vld [vmem:[#allocation5 + $0x94] ss:$8 sps:$4 sm:$0xff]   ;;  %v1182_v10 = vld [vmem:[#allocation5 + $0x90] ss:$8 sps:$4 sm:$0xff]  }
 0x13f   :  { %v640_v30 = vsel %vm638_vm1, %v634_v29, 0  ;;  %v1187_v11 = vld [vmem:[#allocation5 + $0xa4] ss:$8 sps:$4 sm:$0xff]   ;;  %v1185_v12 = vld [vmem:[#allocation5 + $0xa0] ss:$8 sps:$4 sm:$0xff]  }
 0x140   :  { %520 = vrot.lane.b32.xlu0 %v469_v5, %s1291_s19  ;;  %v1178_v5 = vld [vmem:[#allocation5 + $0x74] ss:$8 sps:$4 sm:$0xff]   ;;  %v1200_v29 = vld [vmem:[#allocation5 + $0xf0] ss:$8 sps:$4 sm:$0xff]  }
 0x141   :  { %v1190_v13 = vld [vmem:[#allocation5 + $0xb4] ss:$8 sps:$4 sm:$0xff]  }
 0x1ae   :  { %v531_v15 = vpop.permute.xlu0 %530 }
 0x1af   :  { %v532_v17 = vmul.f32 %v531_v15, %v518_v14  ;;  %v526_v18 = vpop.permute.xlu1 %525  ;;  %v1193_v15 = vld [vmem:[#allocation5 + $0xc4] ss:$8 sps:$4 sm:$0xff]  }
 0x1b0   :  { %v527_v20 = vmul.f32 %v526_v18, %v518_v14  ;;  %v1194_v18 = vld [vmem:[#allocation5 + $0xd0] ss:$8 sps:$4 sm:$0xff]  }
 0x1b1   :  { %v533_v19 = vadd.f32 %v532_v17, %v529_v16  ;;  %v1191_v16 = vld [vmem:[#allocation5 + $0xc0] ss:$8 sps:$4 sm:$0xff]   ;;  %v1196_v17 = vld [vmem:[#allocation5 + $0xd4] ss:$8 sps:$4 sm:$0xff]  }
 0x1b2   :  { %v521_v21 = vpop.permute.xlu0 %520  ;;  %v528_v26 = vadd.f32 %v527_v20, %v524_v23  ;;  %v1197_v20 = vld [vmem:[#allocation5 + $0xe0] ss:$8 sps:$4 sm:$0xff]  }
 0x1b3   :  { %v535_v24 = vpack.c.bf16 %v533_v19, %v533_v19  ;;  %v522_v25 = vmul.f32 %v521_v21, %v518_v14  ;;  %v1188_v14 = vld [vmem:[#allocation5 + $0xb0] ss:$8 sps:$4 sm:$0xff]   ;;  %v1199_v19 = vld [vmem:[#allocation5 + $0xe4] ss:$8 sps:$4 sm:$0xff]  }
 0x1b5   :  { %v523_v27 = vadd.f32 %v522_v25, %v519_v22  ;;  %1038 = vmatpush3.bf16.xpose.msra.mxu1 %v535_v24 }
 0x1b6   :  { %1043 = vmatprep.subr.bf16.mxu1 %v1289_v4 }
 0x1b7   :  { %v534_v28 = vpack.c.bf16 %v528_v26, %v523_v27 }
 0x1bc   :  { %1040 = vmatmul.mubr.bf16.vlgmr.msra.gmra.mrb[4].mxu1 %v534_v28  ;;  %v1202_v28 = vld [vmem:[#allocation5 + $0xf4] ss:$8 sps:$4 sm:$0xff]  }
 0x1bd   :  { %1044 = vmatpush3.bf16.msra.mxu1 %v640_v30  ;;  %1045 = vmatprep.mubr.msk.bf16.mxu1 %vm1290_vm0, %v1289_v4  ;;  %v1173_v4 = vld [vmem:[#allocation5 + $0x60] ss:$8 sps:$4 sm:$0xff]  }
 0x1be   :  { %890 = vmatpush1.bf16.msra.mxu0 %v1173_v4 }
 0x1bf   :  { %891 = vmatprep.subr.bf16.mxu0 %v1178_v5 }
 0x1c2   :  { %892 = vmatpush1.bf16.msra.mxu0 %v1176_v6 }
 0x1c3   :  { %893 = vmatprep.subr.bf16.mxu0 %v1181_v7 }
 0x1c6   :  { %894 = vmatpush1.bf16.msra.mxu0 %v1179_v8 }
 0x1c7   :  { %895 = vmatprep.subr.bf16.mxu0 %v1184_v9 }
 0x1ca   :  { %896 = vmatpush1.bf16.msra.mxu0 %v1182_v10 }
 0x1cb   :  { %897 = vmatprep.subr.bf16.mxu0 %v1187_v11 }
 0x1ce   :  { %898 = vmatpush1.bf16.msra.mxu0 %v1185_v12 }
 0x1cf   :  { %899 = vmatprep.subr.bf16.mxu0 %v1190_v13 }
 0x1d2   :  { %900 = vmatpush1.bf16.msra.mxu0 %v1188_v14 }
 0x1d3   :  { %901 = vmatprep.subr.bf16.mxu0 %v1193_v15 }
 0x1d6   :  { %902 = vmatpush1.bf16.msra.mxu0 %v1191_v16 }
 0x1d7   :  { %903 = vmatprep.subr.bf16.mxu0 %v1196_v17 }
 0x1da   :  { %904 = vmatpush1.bf16.msra.mxu0 %v1194_v18 }
 0x1db   :  { %905 = vmatprep.subr.bf16.mxu0 %v1199_v19 }
 0x1de   :  { %906 = vmatpush1.bf16.msra.mxu0 %v1197_v20 }
 0x1df   :  { %907 = vmatprep.subr.bf16.mxu0 %v1202_v28 }
 0x1e2   :  { %908 = vmatpush1.bf16.msra.mxu0 %v1200_v29 }
 0x28f   :  { %v570_v37 = vpop.f32.mrb[4].mxu1 }
 0x290   :  { %v608_v38 = vsel %vm606_vm2, %v570_v37, -1e+30  ;;  %v1041_v39 = vpop.f32.mrb[5].mxu1 }
 0x291   :  { %v573_v40 = vpop.f32.mrb[6].mxu1  ;;  %v611_v41 = vsel %vm610_vm3, %v608_v38, -inf }
 0x292   :  { %v609_v42 = vsel %vm607_vm4, %v573_v40, -1e+30  ;;  %612 = vmax.xlane.f32.xlu1 %v611_v41  ;;  %v1042_v43 = vpop.f32.mrb[7].mxu1 }
 0x293   :  { %v614_v44 = vsel %vm610_vm3, %v609_v42, -inf }
 0x294   :  { %615 = vmax.xlane.f32.xlu0 %v614_v44 }
 0x31f   :  { %v613_v45 = vpop.xlane.xlu1 %612 }
 0x320   :  { %v617_v46 = vsub.f32 %v608_v38, %v613_v45 }
 0x321   :  { %v616_v47 = vpop.xlane.xlu0 %615 }
 0x322   :  { %v619_v48 = vmul.f32 1.442695, %v617_v46  ;;  %v618_v49 = vsub.f32 %v609_v42, %v616_v47 }
 0x324   :  { %1203 = vpow2.f32 %v619_v48  ;;  %v621_v50 = vmul.f32 1.442695, %v618_v49 }
 0x326   :  { %1205 = vpow2.f32 %v621_v50 }
 0x32e   :  { %v1358_v51 = vpop.eup %1203 }
 0x32f   :  { %v623_v52 = vsel %vm610_vm3, %v1358_v51, 0.0 }
 0x330   :  { %v1362_v53 = vpop.eup %1205  ;;  %624 = vadd.xlane.f32.xlu0 %v623_v52 }
 0x331   :  { %v626_v54 = vsel %vm610_vm3, %v1362_v53, 0.0 }
 0x332   :  { %627 = vadd.xlane.f32.xlu1 %v626_v54 }
 0x3bd   :  { %v625_v21 = vpop.xlane.xlu0 %624 }
 0x3be   :  { %1207 = vrcp.f32 %v625_v21 }
 0x3bf   :  { %v628_v22 = vpop.xlane.xlu1 %627 }
 0x3c0   :  { %1209 = vrcp.f32 %v628_v22 }
 0x3c8   :  { %v1208_v23 = vpop.eup %1207 }
 0x3c9   :  { %v631_v25 = vmul.f32 %v1208_v23, %v1358_v51 }
 0x3ca   :  { %v1210_v24 = vpop.eup %1209 }
 0x3cb   :  { %v632_v26 = vmul.f32 %v1210_v24, %v1362_v53 }
 0x3cd   :  { %v633_v27 = vpack.c.bf16 %v632_v26, %v631_v25 }
 0x3cf   :  { %1046 = vmatmul.mubr.msk.bf16.vlgmr.msra.gmra.mrb[8].mxu1 %vm610_vm3, %v633_v27 }
 0x4a2   :  { %v676_v30 = vpop.f32.mrb[8].mxu1 }
 0x4a3   :  { %v1047_v31 = vpop.f32.mrb[9].mxu1  ;;  %v683_v35 = vpack.c.bf16 %v676_v30, %v676_v30 }
 0x4a4   :  { %v679_v32 = vpop.f32.mrb[10].mxu1 }
 0x4a5   :  { %v684_v33 = vpack.c.bf16 %v679_v32, %v679_v32  ;;  %v1048_v34 = vpop.f32.mrb[11].mxu1 }
 0x4a7   :  { %909 = vmatprep.mubr.bf16.mxu0 %v684_v33 }
 0x4a8   :  { %910 = vmatmul.mubr.bf16.vlgmr.msra.gmra.mrb[4].mxu0 %v683_v35 }
 0x57b   :  { %v911_v36 = vpop.f32.mrb[4].mxu0 }
 0x57c   :  { %918 = vst [vmem:[#allocation7] sm:$0xff] %v911_v36  ;;  %v913_v37 = vpop.f32.mrb[5].mxu0 }
 0x57d   :  { %919 = vst [vmem:[#allocation7 + $0x8] sm:$0xff] %v913_v37  ;;  %v915_v38 = vpop.f32.mrb[6].mxu0 }
 0x57e   :  { %v916_v39 = vpop.f32.mrb[7].mxu0 }
 0x57f   :  { %1266 = shalt.err (!%p1263_p6)
}
 0x580   :  { %s1267_s27 = scalar_lea.hbm %s1385_s4, 256 }
 0x581   :  { %p1268_p7 = scmp.ne.s32.totalorder %s1385_s4, %s1267_s27  ;;  %p1271_p8 = scmp.lt.u32.totalorder %s1267_s27, %s1385_s4 }
 0x583   :  { %p1273_p9 = pnand %p1271_p8, %p1268_p7 }
 0x585   :  { %1276 = shalt.err (!%p1273_p9)
}
 0x586   :  { %929 = dma.vmem_to_hbm [thread:$0]  %s927_s23, 256, %s1385_s4, [#allocation4]  }
 0x587   :  { %1281 = dma.done.wait [#allocation4], 256  }
 0x588   :  { %1282 = vsyncadd [#allocation4], 4294967040 }
 0x589   :  { %933 = vsyncpa [#allocation3], 1 }
 0x58a   :  { %934 = vsyncpa [#allocation6], 1 }
 0x58b   :  { %935 = vsyncpa [#allocation4], 1 }

</bundles_post_ra>
